<compile_context>
chip_gen: v6e
topology: v6e:2x2x1
jax: 0.10.0
libtpu: 0.0.40
codegen_flags: <defaults>
</compile_context>

<pallas_src>
import jax
import jax.numpy as jnp
from jax.experimental import pallas as pl
from jax.experimental.pallas import tpu as pltpu


def _round_up(x, m):
    return (x + m - 1) // m * m


# ---------------- Pass 1: item tower -> transposed bf16 embeddings ----------
def item_tower_kernel(item_ref, w1_ref, b1_ref, w2_ref, b2_ref, emb_t_ref):
    h = jnp.dot(item_ref[...], w1_ref[...],
                preferred_element_type=jnp.float32) + b1_ref[...]
    h = jnp.maximum(h, 0.0)
    e = jnp.dot(h.astype(jnp.bfloat16), w2_ref[...],
                preferred_element_type=jnp.float32) + b2_ref[...]
    # Transpose ONCE per item tile so the score pass is a natural
    # (M,K)x(K,N) matmul with no per-step XLU transpose.
    emb_t_ref[...] = e.T.astype(jnp.bfloat16)


# ---------------- Pass 2: user tower -> bf16 embeddings ---------------------
def user_tower_kernel(user_ref, w1_ref, b1_ref, w2_ref, b2_ref, emb_ref):
    h = jnp.dot(user_ref[...], w1_ref[...],
                preferred_element_type=jnp.float32) + b1_ref[...]
    h = jnp.maximum(h, 0.0)
    e = jnp.dot(h.astype(jnp.bfloat16), w2_ref[...],
                preferred_element_type=jnp.float32) + b2_ref[...]
    emb_ref[...] = e.astype(jnp.bfloat16)


# ---------------- Pass 3: tiled score matmul --------------------------------
def score_kernel(u_emb_ref, i_emb_t_ref, scores_ref):
    scores_ref[...] = jnp.dot(u_emb_ref[...], i_emb_t_ref[...],
                              preferred_element_type=jnp.float32)


def two_tower_forward(user_feats, item_feats, params, *,
                      tile_b=256, tile_n=1024, vmem_limit_bytes=32 << 20):
    """Two-tower scoring: returns (B, N) f32 similarity matrix."""
    B, Du = user_feats.shape
    N, Di = item_feats.shape
    H = params["w1u"].shape[1]
    E = params["w2u"].shape[1]

    bf16 = jnp.bfloat16
    f32 = jnp.float32

    # Lane-pad only the weight OUTPUT dims (H, E); zero padding is exact.
    Hp = _round_up(H, 128)
    Ep = _round_up(E, 128)

    # Tile sizes: TB multiple of 8 (sublanes), TN multiple of 128 (lanes).
    TB = min(_round_up(tile_b, 8), _round_up(B, 8))
    Bp = _round_up(B, TB)
    TN = min(_round_up(tile_n, 128), _round_up(N, 128))
    Np = _round_up(N, TN)

    # Row-pad only (feature dims stay unpadded; Mosaic pads K inside vregs).
    u = jnp.pad(user_feats, ((0, Bp - B), (0, 0))).astype(bf16)
    it = jnp.pad(item_feats, ((0, Np - N), (0, 0))).astype(bf16)

    def _pad_w(w, rows, cols):
        r, c = w.shape
        return jnp.pad(w, ((0, rows - r), (0, cols - c)))

    w1u = _pad_w(params["w1u"], Du, Hp).astype(bf16)
    b1u = _pad_w(params["b1u"], 1, Hp).astype(f32)
    w2u = _pad_w(params["w2u"], Hp, Ep).astype(bf16)
    b2u = _pad_w(params["b2u"], 1, Ep).astype(f32)
    w1i = _pad_w(params["w1i"], Di, Hp).astype(bf16)
    b1i = _pad_w(params["b1i"], 1, Hp).astype(f32)
    w2i = _pad_w(params["w2i"], Hp, Ep).astype(bf16)
    b2i = _pad_w(params["b2i"], 1, Ep).astype(f32)

    n_item_tiles = Np // TN
    n_batch_tiles = Bp // TB
    const2 = lambda j: (0, 0)  # weights stay VMEM-resident (constant block)

    # ------------------------- Pass 1: item tower ---------------------------
    item_cost = pl.CostEstimate(
        flops=2 * Np * Di * Hp + 2 * Np * Hp * Ep,
        transcendentals=0,
        bytes_accessed=(it.size * 2 + w1i.size * 2 + w2i.size * 2
                        + b1i.size * 4 + b2i.size * 4 + Ep * Np * 2),
    )
    item_emb_t = pl.pallas_call(
        item_tower_kernel,
        out_shape=jax.ShapeDtypeStruct((Ep, Np), bf16),
        grid_spec=pltpu.PrefetchScalarGridSpec(
            num_scalar_prefetch=0,
            grid=(n_item_tiles,),
            in_specs=[
                pl.BlockSpec((TN, Di), lambda j: (j, 0)),   # item feats, unpadded Di
                pl.BlockSpec((Di, Hp), const2),
                pl.BlockSpec((1, Hp), const2),
                pl.BlockSpec((Hp, Ep), const2),
                pl.BlockSpec((1, Ep), const2),
            ],
            out_specs=pl.BlockSpec((Ep, TN), lambda j: (0, j)),
        ),
        compiler_params=pltpu.CompilerParams(
            dimension_semantics=("parallel",),
            vmem_limit_bytes=vmem_limit_bytes,
        ),
        cost_estimate=item_cost,
    )(it, w1i, b1i, w2i, b2i)

    # ------------------------- Pass 2: user tower ---------------------------
    user_cost = pl.CostEstimate(
        flops=2 * Bp * Du * Hp + 2 * Bp * Hp * Ep,
        transcendentals=0,
        bytes_accessed=(u.size * 2 + w1u.size * 2 + w2u.size * 2
                        + b1u.size * 4 + b2u.size * 4 + Bp * Ep * 2),
    )
    user_emb = pl.pallas_call(
        user_tower_kernel,
        out_shape=jax.ShapeDtypeStruct((Bp, Ep), bf16),
        grid_spec=pltpu.PrefetchScalarGridSpec(
            num_scalar_prefetch=0,
            grid=(n_batch_tiles,),
            in_specs=[
                pl.BlockSpec((TB, Du), lambda i: (i, 0)),   # user feats, unpadded Du
                pl.BlockSpec((Du, Hp), const2),
                pl.BlockSpec((1, Hp), const2),
                pl.BlockSpec((Hp, Ep), const2),
                pl.BlockSpec((1, Ep), const2),
            ],
            out_specs=pl.BlockSpec((TB, Ep), lambda i: (i, 0)),
        ),
        compiler_params=pltpu.CompilerParams(
            dimension_semantics=("parallel",),
            vmem_limit_bytes=vmem_limit_bytes,
        ),
        cost_estimate=user_cost,
    )(u, w1u, b1u, w2u, b2u)

    # ------------------------- Pass 3: score matmul -------------------------
    # Grid (item_tiles, batch_tiles): the long item axis leads and both axes
    # are parallel (no carried state), so v7x can shard across TensorCores.
    score_cost = pl.CostEstimate(
        flops=2 * Bp * Np * Ep,
        transcendentals=0,
        bytes_accessed=(Ep * Np * 2                      # item embs, once each
                        + Bp * Ep * 2 * n_item_tiles     # user embs re-read per item tile
                        + Bp * Np * 4),                  # scores out
    )
    scores = pl.pallas_call(
        score_kernel,
        out_shape=jax.ShapeDtypeStruct((Bp, Np), jnp.float32),
        grid_spec=pltpu.PrefetchScalarGridSpec(
            num_scalar_prefetch=0,
            grid=(n_item_tiles, n_batch_tiles),
            in_specs=[
                pl.BlockSpec((TB, Ep), lambda j, i: (i, 0)),
                pl.BlockSpec((Ep, TN), lambda j, i: (0, j)),
            ],
            out_specs=pl.BlockSpec((TB, TN), lambda j, i: (i, j)),
        ),
        compiler_params=pltpu.CompilerParams(
            dimension_semantics=("parallel", "parallel"),
            vmem_limit_bytes=vmem_limit_bytes,
        ),
        cost_estimate=score_cost,
    )(user_emb, item_emb_t)

    return scores[:B, :N]


def init_params(user_dim, item_dim, hidden, embed):
    """Deterministic synthetic parameter init (no checkpoint load)."""
    key = jax.random.PRNGKey(42)
    ks = jax.random.split(key, 8)

    def dense(k, fan_in, fan_out):
        scale = 1.0 / jnp.sqrt(jnp.float32(fan_in))
        return jax.random.uniform(k, (fan_in, fan_out), jnp.float32,
                                  -scale, scale)

    def bias(k, fan_in, fan_out):
        scale = 1.0 / jnp.sqrt(jnp.float32(fan_in))
        return jax.random.uniform(k, (1, fan_out), jnp.float32, -scale, scale)

    return {
        "w1u": dense(ks[0], user_dim, hidden), "b1u": bias(ks[1], user_dim, hidden),
        "w2u": dense(ks[2], hidden, embed),    "b2u": bias(ks[3], hidden, embed),
        "w1i": dense(ks[4], item_dim, hidden), "b1i": bias(ks[5], item_dim, hidden),
        "w2i": dense(ks[6], hidden, embed),    "b2i": bias(ks[7], hidden, embed),
    }


if __name__ == "__main__":
    # Small but grid-exercising shapes: 16 users (2 batch tiles of 8),
    # 256 candidate items (2 item tiles of 128), feature dims 32/32/64/32.
    # (Production defaults are tile_b=256, tile_n=1024; small tiles are
    # forced here only so the multi-tile grid paths are exercised.)
    B, N = 16, 256
    USER_DIM, ITEM_DIM, HIDDEN, EMBED = 32, 32, 64, 32

    key = jax.random.PRNGKey(0)
    ku, ki = jax.random.split(key)
    user_feats = jax.random.normal(ku, (B, USER_DIM), jnp.float32)
    item_feats = jax.random.normal(ki, (N, ITEM_DIM), jnp.float32)
    params = init_params(USER_DIM, ITEM_DIM, HIDDEN, EMBED)

    scores = two_tower_forward(user_feats, item_feats, params,
                               tile_b=8, tile_n=128)
    jax.block_until_ready(scores)

    # Pure-JAX reference with the same bf16-operand / f32-accumulate math.
    def ref(u, it, p):
        bf = jnp.bfloat16
        uh = jnp.maximum(jnp.dot(u.astype(bf), p["w1u"].astype(bf),
                                 preferred_element_type=jnp.float32) + p["b1u"], 0.0)
        ue = jnp.dot(uh.astype(bf), p["w2u"].astype(bf),
                     preferred_element_type=jnp.float32) + p["b2u"]
        ih = jnp.maximum(jnp.dot(it.astype(bf), p["w1i"].astype(bf),
                                 preferred_element_type=jnp.float32) + p["b1i"], 0.0)
        ie = jnp.dot(ih.astype(bf), p["w2i"].astype(bf),
                     preferred_element_type=jnp.float32) + p["b2i"]
        return jax.lax.dot_general(ue.astype(bf), ie.astype(bf),
                                   (((1,), (1,)), ((), ())),
                                   preferred_element_type=jnp.float32)

    expected = ref(user_feats, item_feats, params)
    assert scores.shape == (B, N)
    max_err = float(jnp.max(jnp.abs(scores - expected)))
    assert jnp.allclose(scores, expected, atol=2e-2, rtol=2e-2), max_err

    print("KERNEL_OK")
</pallas_src>

<mosaic_0001>
module attributes {stable_mosaic.version = 11 : i64} {
  func.func @item_tower_kernel(%arg0: i32, %arg1: memref<128x32xbf16, #tpu.memory_space<vmem>>, %arg2: memref<32x128xbf16, #tpu.memory_space<vmem>>, %arg3: memref<1x128xf32, #tpu.memory_space<vmem>>, %arg4: memref<128x128xbf16, #tpu.memory_space<vmem>>, %arg5: memref<1x128xf32, #tpu.memory_space<vmem>>, %arg6: memref<128x128xbf16, #tpu.memory_space<vmem>>) attributes {dimension_semantics = [#tpu.dimension_semantics<parallel>], iteration_bounds = array<i64: 2>, scalar_prefetch = 0 : i64, scratch_operands = 0 : i64, tpu.core_type = #tpu.core_type<tc>, window_params = [{transform_indices = @transform_0, window_bounds = array<i64: 128, 32>}, {pipeline_mode = #tpu.pipeline_mode<synchronous>, transform_indices = @transform_1, window_bounds = array<i64: 32, 128>}, {pipeline_mode = #tpu.pipeline_mode<synchronous>, transform_indices = @transform_2, window_bounds = array<i64: 1, 128>}, {pipeline_mode = #tpu.pipeline_mode<synchronous>, transform_indices = @transform_3, window_bounds = array<i64: 128, 128>}, {pipeline_mode = #tpu.pipeline_mode<synchronous>, transform_indices = @transform_4, window_bounds = array<i64: 1, 128>}, {transform_indices = @transform_5, window_bounds = array<i64: 128, 128>}]} {
    %c0 = arith.constant 0 : index
    %c0_0 = arith.constant 0 : index
    %0 = vector.load %arg1[%c0, %c0_0] : memref<128x32xbf16, #tpu.memory_space<vmem>>, vector<128x32xbf16>
    %c0_1 = arith.constant 0 : index
    %c0_2 = arith.constant 0 : index
    %1 = vector.load %arg2[%c0_1, %c0_2] : memref<32x128xbf16, #tpu.memory_space<vmem>>, vector<32x128xbf16>
    %cst = arith.constant dense<0.000000e+00> : vector<128x128xf32>
    %2 = tpu.matmul %0, %1, %cst {dimension_numbers = #tpu.dot_dimension_numbers<[1], [0], [0], [1], [0, 0, 1, 1], [], []>} : vector<128x32xbf16>, vector<32x128xbf16>, vector<128x128xf32> -> vector<128x128xf32>
    %c0_3 = arith.constant 0 : index
    %c0_4 = arith.constant 0 : index
    %3 = vector.load %arg3[%c0_3, %c0_4] : memref<1x128xf32, #tpu.memory_space<vmem>>, vector<1x128xf32>
    %4 = vector.broadcast %3 : vector<1x128xf32> to vector<128x128xf32>
    %5 = arith.addf %2, %4 : vector<128x128xf32>
    %cst_5 = arith.constant 0.000000e+00 : f32
    %6 = vector.broadcast %cst_5 : f32 to vector<128x128xf32>
    %7 = arith.maximumf %5, %6 : vector<128x128xf32>
    %8 = arith.truncf %7 : vector<128x128xf32> to vector<128x128xbf16>
    %c0_6 = arith.constant 0 : index
    %c0_7 = arith.constant 0 : index
    %9 = vector.load %arg4[%c0_6, %c0_7] : memref<128x128xbf16, #tpu.memory_space<vmem>>, vector<128x128xbf16>
    %cst_8 = arith.constant dense<0.000000e+00> : vector<128x128xf32>
    %10 = tpu.matmul %8, %9, %cst_8 {dimension_numbers = #tpu.dot_dimension_numbers<[1], [0], [0], [1], [0, 0, 1, 1], [], []>} : vector<128x128xbf16>, vector<128x128xbf16>, vector<128x128xf32> -> vector<128x128xf32>
    %c0_9 = arith.constant 0 : index
    %c0_10 = arith.constant 0 : index
    %11 = vector.load %arg5[%c0_9, %c0_10] : memref<1x128xf32, #tpu.memory_space<vmem>>, vector<1x128xf32>
    %12 = vector.broadcast %11 : vector<1x128xf32> to vector<128x128xf32>
    %13 = arith.addf %10, %12 : vector<128x128xf32>
    %14 = tpu.transpose %13, [1, 0] : vector<128x128xf32> -> vector<128x128xf32>
    %15 = arith.truncf %14 : vector<128x128xf32> to vector<128x128xbf16>
    %c0_11 = arith.constant 0 : index
    %c0_12 = arith.constant 0 : index
    %16 = vector.load %arg6[%c0_11, %c0_12] : memref<128x128xbf16, #tpu.memory_space<vmem>>, vector<128x128xbf16>
    tpu.vector_store %arg6[%c0_11, %c0_12], %15 {strides = array<i32>} : memref<128x128xbf16, #tpu.memory_space<vmem>>, vector<128x128xbf16>,
    return
  }
  func.func @transform_0(%arg0: i32) -> (i32, i32) {
    %c0_i32 = arith.constant 0 : i32
    %c0_i32_0 = arith.constant 0 : i32
    return %arg0, %c0_i32 : i32, i32
  }
  func.func @transform_1(%arg0: i32) -> (i32, i32) {
    %c0_i32 = arith.constant 0 : i32
    %c0_i32_0 = arith.constant 0 : i32
    %c0_i32_1 = arith.constant 0 : i32
    return %c0_i32, %c0_i32_0 : i32, i32
  }
  func.func @transform_2(%arg0: i32) -> (i32, i32) {
    %c0_i32 = arith.constant 0 : i32
    %c0_i32_0 = arith.constant 0 : i32
    %c0_i32_1 = arith.constant 0 : i32
    return %c0_i32, %c0_i32_0 : i32, i32
  }
  func.func @transform_3(%arg0: i32) -> (i32, i32) {
    %c0_i32 = arith.constant 0 : i32
    %c0_i32_0 = arith.constant 0 : i32
    %c0_i32_1 = arith.constant 0 : i32
    return %c0_i32, %c0_i32_0 : i32, i32
  }
  func.func @transform_4(%arg0: i32) -> (i32, i32) {
    %c0_i32 = arith.constant 0 : i32
    %c0_i32_0 = arith.constant 0 : i32
    %c0_i32_1 = arith.constant 0 : i32
    return %c0_i32, %c0_i32_0 : i32, i32
  }
  func.func @transform_5(%arg0: i32) -> (i32, i32) {
    %c0_i32 = arith.constant 0 : i32
    %c0_i32_0 = arith.constant 0 : i32
    return %c0_i32, %arg0 : i32, i32
  }
}

</mosaic_0001>

<bundles_post_ra>
// kernel: tpu_custom_call.1
= control target key start
LH: loop header
LB: loop body
LE: loop exit
PB: predicated region body
PF: predicated region fallthrough
CT: control target
= control target key end

     0   :  { %10 = vsyncpa [#allocation3], 0  ;;  %s1344_s0 = inlined_call_operand.vmem [shape: bf16[256,32], index: 0, kind: input, shape index: {}]   ;;  %s1345_s1 = inlined_call_operand.vmem [shape: bf16[32,128], index: 1, kind: input, shape index: {}]   ;;  %s1346_s2 = inlined_call_operand.vmem [shape: f32[1,128], index: 2, kind: input, shape index: {}]   ;;  %s1347_s3 = inlined_call_operand.vmem [shape: bf16[128,128], index: 3, kind: input, shape index: {}]   ;;  %s1348_s4 = inlined_call_operand.vmem [shape: f32[1,128], index: 4, kind: input, shape index: {}]   ;;  %s1349_s5 = inlined_call_operand.hbm [shape: bf16[128,256], index: 5, kind: output, shape index: {}]  }
   0x1   :  { %12 = vsyncpa [#allocation3 + $0x1], 0  ;;  %s1174_s18 = smov 0   ;;  %s1176_s19 = smov 0  }
   0x2   :  { %s1178_s20 = smov 0   ;;  %s1180_s21 = smov 0  }
   0x3 LB: > { %s1195_s22 = sadd.s32 4294967295, %s1138_s21   ;;  %s806_s23 = sadd.s32 4294967294, %s1138_s21   ;;  %s1138_s21 = sphi %s1180_s21, %s1355_s21   ;;  %s1134_s20 = sphi %s1178_s20, %s1354_s20   ;;  %s1130_s19 = sphi %s1176_s19, %s1353_s19   ;;  %s1126_s18 = sphi %s1174_s18, %s1352_s18  }
   0x4   : > { %s1199_s24 = sadd.s32 1, %s1138_s21   ;;  %s135_s25 = sadd.s32 1, %s1134_s20 }
   0x5   : > { %s132_s26 = ssub.s32 %s1138_s21, %s1199_s24  ;;  %p145_p0 = scmp.ne.s32.totalorder %s1134_s20, %s1130_s19 }
   0x6   : > { %p133_p1 = scmp.eq.s32.totalorder %s132_s26, 0  ;;  %p146_p2 = scmp.eq.s32.totalorder %s1195_s22, 1 }
   0x7   : > { %p151_p3 = scmp.ne.s32.totalorder %s1130_s19, %s1126_s18  ;;  %p152_p4 = scmp.eq.s32.totalorder %s806_s23, 1 }
   0x8   : > { %s1210_s27 = scalar_select %p133_p1, %s1134_s20, %s135_s25  }
   0x9   : > { %p1212_p5 = por %p146_p2, %p145_p0  ;;  %p1216_p6 = por %p152_p4, %p151_p3 }
   0xa   : > { %p809_p7 = scmp.ge.s32.totalorder %s1138_s21, 1  ;;  %p191_p8 = scmp.lt.s32.totalorder %s1138_s21, 3 }
   0xc   : > { %p192_p9 = pnand %p809_p7, %p191_p8 }
   0xd   : > { %s811_s7 = sshll.u32 (!%p192_p9), %s1195_s22, 4  ;;  %s216_s23 = sand.u32 (!%p192_p9), 1, %s1130_s19  }
   0xe   : > { %195 = sbr.rel (%p192_p9) target bundleno = 633 (0x279), region = 40  ;;  %p220_p10 = scmp.lt.s32.totalorder (!%p192_p9), %s811_s7, 31 }
   0xf   : > { %s810_s25 = sshll.u32 (!%p192_p9), %s216_s23, 6  ;;  %s858_s6 = sshll.u32 (!%p192_p9), %s1195_s22, 6 }
  0x10   : > { %s1283_s26 = scalar_lea.vmem (!%p192_p9), [#allocation2], %s810_s25  ;;  %s1299_s9 = scalar_lea.hbm (!%p192_p9), %s1349_s5, %s858_s6 }
  0x11   : > { %s744_s30 = sshll.u32 (!%p192_p9), %s1283_s26, 4  ;;  %s1304_s10 = scalar_lea.sflag (!%p192_p9), [#allocation3], %s216_s23  ;;  %s1294_s30 = int_to_ptr.vmem [resolvable:$true] %s744_s30 }
  0x12   : > { %s1078_s11 = scalar_lea.vmem (!%p192_p9), %s1294_s30, 1024  ;;  %s1140_s22 = smov (!%p192_p9), [#allocation2]  }
  0x13   : > { %v1060_v0 = vld [vmem:[%s1345_s1 + $0x8] sm:$0xff]   ;;  %v1061_v1 = vld [vmem:[%s1345_s1] sm:$0xff]   ;;  %v1070_v2 = vld [vmem:[%s1347_s3 + $0x38] sm:$0xff]   ;;  %s1357_s7 = smov (!%p220_p10, %s811_s7), 31  ;;  %vm305_vm0 = vcmask 261120   ;;  %p1079_p11 = scmp.ne.s32.totalorder %s1294_s30, %s1078_s11 }
  0x14   : > { %950 = vmatprep.subr.bf16.mxu0 %v1060_v0  ;;  %v1071_v3 = vld [vmem:[%s1347_s3 + $0x30] sm:$0xff]   ;;  %1002 = vmatprep.subr.bf16.mxu1 %v1070_v2  ;;  %s812_s14 = sshll.u32 %s1357_s7, 2  ;;  %v1072_v4 = vld [vmem:[%s1347_s3 + $0x28] sm:$0xff]   ;;  %v1073_v8 = vld [vmem:[%s1347_s3 + $0x20] sm:$0xff]   ;;  %s1082_s12 = sshll.u32 %s1140_s22, 4  ;;  %s1083_s12 = int_to_ptr.vmem [resolvable:$false] %s1082_s12 }
  0x15   : > { %951 = vmatpush3.bf16.msra.mxu0 %v1060_v0  ;;  %1010 = vmatpush3.bf16.msra.mxu1 %v1070_v2  ;;  %s1238_s17 = scalar_lea.vmem %s1344_s0, %s812_s14  ;;  %v1074_v11 = vld [vmem:[%s1347_s3 + $0x18] sm:$0xff]   ;;  %v1075_v15 = vld [vmem:[%s1347_s3 + $0x10] sm:$0xff]   ;;  %v1076_v16 = vld [vmem:[%s1347_s3 + $0x8] sm:$0xff]   ;;  %p1080_p12 = pnand %p1079_p11, %p1212_p5 }
  0x16   : > { %952 = vmatprep.subr.bf16.mxu0 %v1061_v1  ;;  %1003 = vmatprep.subr.bf16.mxu1 %v1071_v3  ;;  %v1062_v5 = vld [vmem:[%s1238_s17] sm:$0xff]   ;;  %v1063_v6 = vld [vmem:[%s1238_s17 + $0x8] sm:$0xff]   ;;  %v1064_v7 = vld [vmem:[%s1238_s17 + $0x10] sm:$0xff]   ;;  %s1084_s13 = scalar_lea.vmem %s1083_s12, 2048  ;;  %p1085_p0 = scmp.lt.s32.totalorder %s1294_s30, %s1083_s12 }
  0x17   : > { %954 = vmatprep.mubr.msk.bf16.mxu0 %vm305_vm0, %v1062_v5  ;;  %v1065_v9 = vld [vmem:[%s1238_s17 + $0x18] sm:$0xff]   ;;  %v1066_v10 = vld [vmem:[%s1238_s17 + $0x20] sm:$0xff]   ;;  %v1067_v12 = vld [vmem:[%s1238_s17 + $0x28] sm:$0xff]   ;;  %p1081_p13 = pneg %p1080_p12  ;;  %p1086_p1 = scmp.lt.s32.totalorder %s1084_s13, %s1078_s11 }
  0x18   : > { %v1068_v13 = vld [vmem:[%s1238_s17 + $0x30] sm:$0xff]   ;;  %v1069_v14 = vld [vmem:[%s1238_s17 + $0x38] sm:$0xff]   ;;  %v1077_v17 = vld [vmem:[%s1347_s3] sm:$0xff]  }
  0x19   : > { %953 = vmatpush3.bf16.msra.mxu0 %v1061_v1  ;;  %1011 = vmatpush3.bf16.msra.mxu1 %v1071_v3  ;;  %v813_v20 = vld [vmem:[%s1346_s2] ss:$0 sm:$0xff]  ;;  %p1087_p2 = por %p1086_p1, %p1085_p0 }
  0x1a   : > { %970 = vmatprep.subr.bf16.mxu0 %v1070_v2  ;;  %1004 = vmatprep.subr.bf16.mxu1 %v1072_v4 }
  0x1b   : > { %p1088_p3 = pnand %p1087_p2, %p1081_p13 }
  0x1c   : > { %955 = vmatmul.mubr.msk.bf16.vlgmr.msra.gmra.mxu0 %vm305_vm0, %v1063_v6 }
  0x1d   : > { %958 = vmatprep.mubr.msk.bf16.mxu0 %vm305_vm0, %v1064_v7  ;;  %971 = vmatpush3.bf16.msra.mxu0 %v1070_v2 }
  0x1e   : > { %972 = vmatprep.subr.bf16.mxu0 %v1071_v3  ;;  %1012 = vmatpush3.bf16.msra.mxu1 %v1072_v4 }
  0x1f   : > { %1005 = vmatprep.subr.bf16.mxu1 %v1073_v8 }
  0x21   : > { %973 = vmatpush3.bf16.msra.mxu0 %v1071_v3 }
  0x22   : > { %974 = vmatprep.subr.bf16.mxu0 %v1072_v4  ;;  %1013 = vmatpush3.bf16.msra.mxu1 %v1073_v8 }
  0x23   : > { %1006 = vmatprep.subr.bf16.mxu1 %v1074_v11 }
  0x24   : > { %959 = vmatmul.mubr.msk.bf16.gmra.mxu0 %vm305_vm0, %v1065_v9 }
  0x25   : > { %962 = vmatprep.mubr.msk.bf16.mxu0 %vm305_vm0, %v1066_v10  ;;  %975 = vmatpush3.bf16.msra.mxu0 %v1072_v4 }
  0x26   : > { %976 = vmatprep.subr.bf16.mxu0 %v1073_v8  ;;  %1014 = vmatpush3.bf16.msra.mxu1 %v1074_v11 }
  0x27   : > { %1007 = vmatprep.subr.bf16.mxu1 %v1075_v15 }
  0x29   : > { %977 = vmatpush3.bf16.msra.mxu0 %v1073_v8 }
  0x2a   : > { %978 = vmatprep.subr.bf16.mxu0 %v1074_v11  ;;  %1015 = vmatpush3.bf16.msra.mxu1 %v1075_v15 }
  0x2b   : > { %1008 = vmatprep.subr.bf16.mxu1 %v1076_v16 }
  0x2c   : > { %963 = vmatmul.mubr.msk.bf16.gmra.mxu0 %vm305_vm0, %v1067_v12  ;;  %v832_v12 = vld [vmem:[%s1348_s4] ss:$0 sm:$0xff] }
  0x2d   : > { %966 = vmatprep.mubr.msk.bf16.mxu0 %vm305_vm0, %v1068_v13  ;;  %979 = vmatpush3.bf16.msra.mxu0 %v1074_v11 }
  0x2e   : > { %980 = vmatprep.subr.bf16.mxu0 %v1075_v15  ;;  %1016 = vmatpush3.bf16.msra.mxu1 %v1076_v16 }
  0x2f   : > { %1009 = vmatprep.subr.bf16.mxu1 %v1077_v17 }
  0x31   : > { %981 = vmatpush3.bf16.msra.mxu0 %v1075_v15 }
  0x32   : > { %982 = vmatprep.subr.bf16.mxu0 %v1076_v16  ;;  %1017 = vmatpush3.bf16.msra.mxu1 %v1077_v17 }
  0x34   : > { %967 = vmatmul.mubr.msk.bf16.gmra.mxu0 %vm305_vm0, %v1069_v14 }
  0x35   : > { %983 = vmatpush3.bf16.msra.mxu0 %v1076_v16 }
  0x36   : > { %984 = vmatprep.subr.bf16.mxu0 %v1077_v17 }
  0x39   : > { %985 = vmatpush3.bf16.msra.mxu0 %v1077_v17 }
  0xdc   : > { %v956_v18 = vpop.f32.mrf.mxu0 }
  0xdd   : > { %v373_v24 = vadd.f32 %v956_v18, %v813_v20 }
  0xde   : > { %v364_v19 = vpop.f32.mrf.mxu0 }
  0xdf   : > { %v365_v22 = vadd.f32 %v813_v20, %v364_v19  ;;  %v429_v31 = vmax.f32 %v373_v24, 0.0 }
  0xe0   : > { %v957_v21 = vpop.f32.mrf.mxu0 }
  0xe1   : > { %v376_v23 = vadd.f32 %v957_v21, %v813_v20  ;;  %v427_v29 = vmax.f32 %v365_v22, 0.0 }
  0xe2   : > { %v367_v25 = vpop.f32.mrf.mxu0 }
  0xe3   : > { %v368_v26 = vadd.f32 %v813_v20, %v367_v25  ;;  %v430_v27 = vmax.f32 %v376_v23, 0.0 }
  0xe4   : > { %v960_v28 = vpop.f32.mrf.mxu0 }
  0xe5   : > { %v428_v30 = vmax.f32 %v368_v26, 0.0  ;;  %v389_v32 = vadd.f32 %v960_v28, %v813_v20  ;;  %v444_v36 = vpack.c.bf16 %v430_v27, %v429_v31 }
  0xe6   : > { %v380_v33 = vpop.f32.mrf.mxu0 }
  0xe7   : > { %v443_v34 = vpack.c.bf16 %v428_v30, %v427_v29  ;;  %v381_v35 = vadd.f32 %v813_v20, %v380_v33  ;;  %v433_v39 = vmax.f32 %v389_v32, 0.0 }
  0xe8   : > { %v961_v37 = vpop.f32.mrf.mxu0 }
  0xe9   : > { %v392_v38 = vadd.f32 %v961_v37, %v813_v20  ;;  %986 = vmatprep.mubr.bf16.mxu0 %v443_v34  ;;  %v431_v41 = vmax.f32 %v381_v35, 0.0 }
  0xea   : > { %v383_v40 = vpop.f32.mrf.mxu0  ;;  %987 = vmatmul.mubr.bf16.vlgmr.msra.gmra.mxu0 %v444_v36 }
  0xeb   : > { %v434_v42 = vmax.f32 %v392_v38, 0.0  ;;  %v384_v43 = vadd.f32 %v813_v20, %v383_v40 }
  0xec   : > { %v964_v44 = vpop.f32.mrf.mxu0 }
  0xed   : > { %v432_v45 = vmax.f32 %v384_v43, 0.0  ;;  %v446_v46 = vpack.c.bf16 %v434_v42, %v433_v39  ;;  %v405_v47 = vadd.f32 %v964_v44, %v813_v20 }
  0xee   : > { %v396_v48 = vpop.f32.mrf.mxu0 }
  0xef   : > { %v397_v49 = vadd.f32 %v813_v20, %v396_v48  ;;  %v445_v50 = vpack.c.bf16 %v432_v45, %v431_v41  ;;  %v437_v53 = vmax.f32 %v405_v47, 0.0 }
  0xf0   : > { %v965_v51 = vpop.f32.mrf.mxu0 }
  0xf1   : > { %990 = vmatprep.mubr.bf16.mxu1 %v445_v50  ;;  %v408_v52 = vadd.f32 %v965_v51, %v813_v20  ;;  %v435_v55 = vmax.f32 %v397_v49, 0.0 }
  0xf2   : > { %991 = vmatmul.mubr.bf16.vlgmr.msra.gmra.mxu1 %v446_v46  ;;  %v399_v54 = vpop.f32.mrf.mxu0 }
  0xf3   : > { %v438_v56 = vmax.f32 %v408_v52, 0.0  ;;  %v400_v57 = vadd.f32 %v813_v20, %v399_v54 }
  0xf4   : > { %v968_v58 = vpop.f32.mrf.mxu0 }
  0xf5   : > { %v436_v59 = vmax.f32 %v400_v57, 0.0  ;;  %v448_v60 = vpack.c.bf16 %v438_v56, %v437_v53  ;;  %v421_v61 = vadd.f32 %v968_v58, %v813_v20 }
  0xf6   : > { %v412_v62 = vpop.f32.mrf.mxu0 }
  0xf7   : > { %v447_v63 = vpack.c.bf16 %v436_v59, %v435_v55  ;;  %v413_v0 = vadd.f32 %v813_v20, %v412_v62  ;;  %v441_v3 = vmax.f32 %v421_v61, 0.0 }
  0xf8   : > { %v969_v1 = vpop.f32.mrf.mxu0 }
  0xf9   : > { %994 = vmatprep.mubr.bf16.mxu1 %v447_v63  ;;  %v424_v2 = vadd.f32 %v969_v1, %v813_v20  ;;  %v439_v5 = vmax.f32 %v413_v0, 0.0 }
  0xfa   : > { %995 = vmatmul.mubr.bf16.gmra.mxu1 %v448_v60  ;;  %v415_v4 = vpop.f32.mrf.mxu0 }
  0xfb   : > { %v442_v6 = vmax.f32 %v424_v2, 0.0  ;;  %v416_v7 = vadd.f32 %v813_v20, %v415_v4 }
  0xfd   : > { %v440_v8 = vmax.f32 %v416_v7, 0.0  ;;  %v450_v9 = vpack.c.bf16 %v442_v6, %v441_v3 }
  0xff   : > { %v449_v10 = vpack.c.bf16 %v440_v8, %v439_v5 }
 0x101   : > { %998 = vmatprep.mubr.bf16.mxu1 %v449_v10 }
 0x102   : > { %999 = vmatmul.mubr.bf16.gmra.mxu1 %v450_v9 }
 0x1aa   : > { %v988_v11 = vpop.f32.mrf.mxu0 }
 0x1ab   : > { %v565_v19 = vadd.f32 %v988_v11, %v832_v12 }
 0x1ac   : > { %v556_v13 = vpop.f32.mrf.mxu0 }
 0x1ad   : > { %v557_v14 = vadd.f32 %v832_v12, %v556_v13 }
 0x1ae   : > { %v989_v15 = vpop.f32.mrf.mxu0 }
 0x1af   : > { %619 = vxpose.xlu0.b32.start [1/16] %v557_v14, 128  ;;  %v568_v21 = vadd.f32 %v989_v15, %v832_v12 }
 0x1b0   : > { %v559_v16 = vpop.f32.mrf.mxu0 }
 0x1b1   : > { %v560_v17 = vadd.f32 %v832_v12, %v559_v16 }
 0x1b2   : > { %v992_v18 = vpop.f32.mrf.mxu1 }
 0x1b3   : > { %620 = vxpose.xlu0.b32.cont [2/16] %v560_v17, 128  ;;  %v581_v27 = vadd.f32 %v992_v18, %v832_v12 }
 0x1b4   : > { %v572_v20 = vpop.f32.mrf.mxu1 }
 0x1b5   : > { %v573_v23 = vadd.f32 %v832_v12, %v572_v20 }
 0x1b6   : > { %v993_v22 = vpop.f32.mrf.mxu1 }
 0x1b7   : > { %621 = vxpose.xlu0.b32.cont [3/16] %v565_v19, 128  ;;  %v584_v29 = vadd.f32 %v993_v22, %v832_v12 }
 0x1b8   : > { %v575_v24 = vpop.f32.mrf.mxu1 }
 0x1b9   : > { %v576_v25 = vadd.f32 %v832_v12, %v575_v24 }
 0x1ba   : > { %v996_v26 = vpop.f32.mrf.mxu1 }
 0x1bb   : > { %622 = vxpose.xlu0.b32.cont [4/16] %v568_v21, 128  ;;  %v597_v35 = vadd.f32 %v996_v26, %v832_v12 }
 0x1bc   : > { %v588_v28 = vpop.f32.mrf.mxu1 }
 0x1bd   : > { %v589_v31 = vadd.f32 %v832_v12, %v588_v28 }
 0x1be   : > { %v997_v30 = vpop.f32.mrf.mxu1 }
 0x1bf   : > { %623 = vxpose.xlu0.b32.cont [5/16] %v573_v23, 128  ;;  %v600_v37 = vadd.f32 %v997_v30, %v832_v12 }
 0x1c0   : > { %v591_v32 = vpop.f32.mrf.mxu1 }
 0x1c1   : > { %v592_v33 = vadd.f32 %v832_v12, %v591_v32 }
 0x1c2   : > { %v1000_v34 = vpop.f32.mrf.mxu1 }
 0x1c3   : > { %624 = vxpose.xlu0.b32.cont [6/16] %v576_v25, 128  ;;  %v613_v42 = vadd.f32 %v1000_v34, %v832_v12 }
 0x1c4   : > { %v604_v36 = vpop.f32.mrf.mxu1 }
 0x1c5   : > { %v605_v39 = vadd.f32 %v832_v12, %v604_v36 }
 0x1c6   : > { %v1001_v38 = vpop.f32.mrf.mxu1 }
 0x1c7   : > { %625 = vxpose.xlu0.b32.cont [7/16] %v581_v27, 128  ;;  %v616_v43 = vadd.f32 %v1001_v38, %v832_v12 }
 0x1c8   : > { %v607_v40 = vpop.f32.mrf.mxu1 }
 0x1c9   : > { %v608_v41 = vadd.f32 %v832_v12, %v607_v40 }
 0x1cb   : > { %626 = vxpose.xlu0.b32.cont [8/16] %v584_v29, 128 }
 0x1cf   : > { %627 = vxpose.xlu0.b32.cont [9/16] %v589_v31, 128 }
 0x1d3   : > { %628 = vxpose.xlu0.b32.cont [10/16] %v592_v33, 128 }
 0x1d7   : > { %629 = vxpose.xlu0.b32.cont [11/16] %v597_v35, 128 }
 0x1db   : > { %630 = vxpose.xlu0.b32.cont [12/16] %v600_v37, 128 }
 0x1df   : > { %631 = vxpose.xlu0.b32.cont [13/16] %v605_v39, 128 }
 0x1e3   : > { %632 = vxpose.xlu0.b32.cont [14/16] %v608_v41, 128 }
 0x1e7   : > { %633 = vxpose.xlu0.b32.cont [15/16] %v613_v42, 128 }
 0x1eb   : > { %634 = vxpose.xlu0.b32.end [16/16] %v616_v43, 128 }
 0x22b   : > { %v635_v44 = vpop.trf.xlu0 }
 0x22f   : > { %v636_v45 = vpop.trf.xlu0 }
 0x230   : > { %v880_v46 = vpack.c.bf16 %v636_v45, %v635_v44 }
 0x232   : > { %881 = vst [vmem:[%s1283_s26] sm:$0xff] %v880_v46  }
 0x233   : > { %v637_v47 = vpop.trf.xlu0 }
 0x237   : > { %v638_v48 = vpop.trf.xlu0 }
 0x238   : > { %v885_v49 = vpack.c.bf16 %v638_v48, %v637_v47 }
 0x23a   : > { %917 = vst [vmem:[%s1283_s26 + $0x8] sm:$0xff] %v885_v49  }
 0x23b   : > { %v639_v50 = vpop.trf.xlu0 }
 0x23f   : > { %v640_v51 = vpop.trf.xlu0 }
 0x240   : > { %v890_v52 = vpack.c.bf16 %v640_v51, %v639_v50 }
 0x242   : > { %918 = vst [vmem:[%s1283_s26 + $0x10] sm:$0xff] %v890_v52  }
 0x243   : > { %v641_v53 = vpop.trf.xlu0 }
 0x247   : > { %v642_v54 = vpop.trf.xlu0 }
 0x248   : > { %v895_v55 = vpack.c.bf16 %v642_v54, %v641_v53 }
 0x24a   : > { %919 = vst [vmem:[%s1283_s26 + $0x18] sm:$0xff] %v895_v55  }
 0x24b   : > { %v643_v56 = vpop.trf.xlu0 }
 0x24f   : > { %v644_v57 = vpop.trf.xlu0 }
 0x250   : > { %v900_v58 = vpack.c.bf16 %v644_v57, %v643_v56 }
 0x252   : > { %920 = vst [vmem:[%s1283_s26 + $0x20] sm:$0xff] %v900_v58  }
 0x253   : > { %v645_v59 = vpop.trf.xlu0 }
 0x257   : > { %v646_v60 = vpop.trf.xlu0 }
 0x258   : > { %v905_v61 = vpack.c.bf16 %v646_v60, %v645_v59 }
 0x25a   : > { %921 = vst [vmem:[%s1283_s26 + $0x28] sm:$0xff] %v905_v61  }
 0x25b   : > { %v647_v62 = vpop.trf.xlu0 }
 0x25f   : > { %v648_v63 = vpop.trf.xlu0 }
 0x260   : > { %v910_v0 = vpack.c.bf16 %v648_v63, %v647_v62 }
 0x262   : > { %922 = vst [vmem:[%s1283_s26 + $0x30] sm:$0xff] %v910_v0  }
 0x263   : > { %v649_v1 = vpop.trf.xlu0 }
 0x267   : > { %v650_v2 = vpop.trf.xlu0 }
 0x268   : > { %v915_v3 = vpack.c.bf16 %v650_v2, %v649_v1 }
 0x26a   : > { %923 = vst [vmem:[%s1283_s26 + $0x38] sm:$0xff] %v915_v3  }
 0x26b   : > { %1091 = shalt.err (!%p1088_p3)
}
 0x26c   : > { %s1092_s14 = scalar_lea.hbm %s1299_s9, 1024  ;;  %s1096_s17 = scalar_lea.hbm %s1349_s5, 2048 }
 0x26d   : > { %p1093_p4 = scmp.ne.s32.totalorder %s1299_s9, %s1092_s14  ;;  %p1097_p9 = scmp.lt.s32.totalorder %s1299_s9, %s1349_s5 }
 0x26e   : > { %p1098_p10 = scmp.lt.s32.totalorder %s1096_s17, %s1092_s14 }
 0x26f   : > { %p1094_p7 = pnand %p1093_p4, %p1212_p5 }
 0x270   : > { %p1099_p11 = por %p1098_p10, %p1097_p9 }
 0x271   : > { %p1095_p8 = pneg %p1094_p7 }
 0x273   : > { %p1100_p12 = pnand %p1099_p11, %p1095_p8 }
 0x275   : > { %1103 = shalt.err (!%p1100_p12)
}
 0x276   : > { %s1141_s26 = smov 64   ;;  %s1142_s6 = smov 128  }
 0x277   : > { %s1143_s7 = smov 4  }
 0x278   : > { %1018 = dma.vmem_to_hbm [thread:$0]  (%p1212_p5), %s1294_s30, 1024, %s1299_s9, %s1304_s10, %s1141_s26, %s1142_s6, %s1143_s7  }
 0x279 PF: > { %p1024_p13 = scmp.ge.s32.totalorder %s1138_s21, 2  ;;  %s759_s8 = sand.u32 1, %s1126_s18  }
 0x27a   : > { %s760_s11 = scalar_lea.sflag [#allocation3], %s759_s8 }
 0x27b   : > { %p1021_p0 = pnand %p1024_p13, %p1216_p6 }
 0x27d   : > { %p1022_p1 = pneg %p1021_p0 }
 0x27f   : > { %1121 = dma.done.wait (%p1022_p1), %s760_s11, 1024  }
 0x280   : > { %1123 = vsyncadd (%p1022_p1), %s760_s11, 4294966272  ;;  %p15_p2 = scmp.ge.s32.totalorder %s1199_s24, 4   ;;  %s1352_s18 = smov %s1130_s19 }
 0x281   : > { %s1353_s19 = smov %s1134_s20  ;;  %s1354_s20 = smov %s1210_s27 }
 0x282   : > { %s1355_s21 = smov %s1199_s24  ;;  %17 = sbr.rel (!%p15_p2) target bundleno = 3 (0x3), region = 75 }
 0x287   :  { %765 = vsyncpa [#allocation3], 1 }
 0x288   :  { %767 = vsyncpa [#allocation3 + $0x1], 1 }

</bundles_post_ra>
